<compile_context>
chip_gen: v6e
topology: v6e:2x2x1
jax: 0.10.0
libtpu: 0.0.40
codegen_flags: <defaults>
</compile_context>

<pallas_src>
import math
import functools

import jax
import jax.numpy as jnp
from jax.experimental import pallas as pl
from jax.experimental.pallas import tpu as pltpu


# ----------------------------------------------------------------------------
# Parameter / buffer construction (glue, mirrors nn.Module.__init__)
# ----------------------------------------------------------------------------
def make_positional_encoding(d_model: int, max_len: int) -> jnp.ndarray:
    position = jnp.arange(max_len, dtype=jnp.float32)[:, None]          # [max_len, 1]
    div_term = jnp.exp(
        jnp.arange(0, d_model, 2, dtype=jnp.float32)
        * (-math.log(10000.0) / d_model)
    )                                                                     # [d_model/2]
    pe = jnp.zeros((max_len, 1, d_model), dtype=jnp.float32)
    pe = pe.at[:, 0, 0::2].set(jnp.sin(position * div_term))
    pe = pe.at[:, 0, 1::2].set(jnp.cos(position * div_term))
    # register_buffer('pe', pe.transpose(1, 0))  -> shape [1, max_len, d_model]
    return jnp.transpose(pe, (1, 0, 2))


# ----------------------------------------------------------------------------
# Pallas kernels
# ----------------------------------------------------------------------------
def _pe_add_kernel(x_ref, pe_ref, o_ref):
    # x_ref: [tS, B*D], pe_ref: [1, B*D] -> broadcast add over the seq tile.
    o_ref[...] = x_ref[...] + pe_ref[...]


def _pe_add_dropout_kernel(x_ref, pe_ref, bits_ref, o_ref, *, threshold, scale):
    # Inverted dropout: keep iff bits >= threshold (P(keep) = 1 - p), scale
    # kept values by 1 / (1 - p).  Single uint32 compare + select per element.
    y = x_ref[...] + pe_ref[...]
    keep = bits_ref[...] >= jnp.uint32(threshold)
    o_ref[...] = jnp.where(keep, y * jnp.asarray(scale, y.dtype), jnp.zeros_like(y))


# ----------------------------------------------------------------------------
# Wrapper
# ----------------------------------------------------------------------------
def _seq_tile_rows(S: int, row_bytes: int, target_bytes: int = 2 * 1024 * 1024) -> int:
    """Rows per tile: ~target_bytes per x-tile, multiple of 8 (sublane), <= S."""
    t = max(1, target_bytes // max(row_bytes, 1))
    if t >= S:
        return S
    return max(8, (t // 8) * 8)


def positional_encoding_forward(x, pe, *, p: float = 0.1,
                                training: bool = False, rng_key=None):
    """x: [seq_len, batch, d_model]; pe: [1, max_len, d_model] (the buffer)."""
    S, B, D = x.shape
    # Reproduces the PyTorch quirk: the table is sliced by the batch dim.
    pe_slice = pe[:, :B, :]

    BD = B * D
    x2 = x.reshape(S, BD)                       # lane-dense last dim
    pe2 = pe_slice.reshape(1, BD).astype(x2.dtype)

    t_s = _seq_tile_rows(S, BD * x2.dtype.itemsize)
    grid = (pl.cdiv(S, t_s),)

    x_spec = pl.BlockSpec((t_s, BD), lambda i: (i, 0))
    pe_spec = pl.BlockSpec((1, BD), lambda i: (0, 0))     # resident across grid
    out_shape = jax.ShapeDtypeStruct((S, BD), x2.dtype)
    cparams = pltpu.CompilerParams(
        dimension_semantics=("parallel",),                # megacore on v7x
        vmem_limit_bytes=32 * 1024 * 1024,
    )

    if (not training) or p == 0.0:
        out2 = pl.pallas_call(
            _pe_add_kernel,
            out_shape=out_shape,
            grid=grid,
            in_specs=[x_spec, pe_spec],
            out_specs=x_spec,
            compiler_params=cparams,
        )(x2, pe2)
        return out2.reshape(S, B, D)

    if rng_key is None:
        rng_key = jax.random.PRNGKey(0)
    bits = jax.random.bits(rng_key, (S, BD), dtype=jnp.uint32)
    threshold = min(int(round(p * (2 ** 32))), 2 ** 32 - 1)
    scale = 1.0 / (1.0 - p)

    out2 = pl.pallas_call(
        functools.partial(_pe_add_dropout_kernel, threshold=threshold, scale=scale),
        out_shape=out_shape,
        grid=grid,
        in_specs=[x_spec, pe_spec, x_spec],   # bits stream tiled like x
        out_specs=x_spec,
        compiler_params=cparams,
    )(x2, pe2, bits)
    return out2.reshape(S, B, D)


# ----------------------------------------------------------------------------
# Demo / self-test
# ----------------------------------------------------------------------------
if __name__ == "__main__":
    seq_len, batch, d_model, max_len = 8, 4, 32, 64

    key = jax.random.PRNGKey(0)
    x = jax.random.normal(key, (seq_len, batch, d_model), dtype=jnp.float32)

    pe = make_positional_encoding(d_model, max_len)

    # Eval-mode forward (dropout == identity): must match x + pe[:, :batch, :]
    out = positional_encoding_forward(x, pe, p=0.1, training=False)
    out = jax.block_until_ready(out)

    ref = x + pe[:, :batch, :]
    assert out.shape == (seq_len, batch, d_model)
    assert jnp.allclose(out, ref, atol=1e-6, rtol=1e-6)

    # Training-mode forward: every element must be either 0 (dropped) or the
    # reference value scaled by 1/(1-p) (kept).
    drop_key = jax.random.PRNGKey(1234)
    out_train = positional_encoding_forward(x, pe, p=0.1, training=True,
                                            rng_key=drop_key)
    out_train = jax.block_until_ready(out_train)
    assert out_train.shape == (seq_len, batch, d_model)
    scaled = ref * (1.0 / (1.0 - 0.1))
    is_zero = jnp.isclose(out_train, 0.0, atol=1e-6)
    is_kept = jnp.isclose(out_train, scaled, atol=1e-5, rtol=1e-5)
    assert bool(jnp.all(jnp.logical_or(is_zero, is_kept)))

    print("KERNEL_OK")
</pallas_src>

<mosaic_0001>
module attributes {stable_mosaic.version = 11 : i64} {
  func.func @_pe_add_kernel(%arg0: i32, %arg1: memref<8x128xf32, #tpu.memory_space<vmem>>, %arg2: memref<1x128xf32, #tpu.memory_space<vmem>>, %arg3: memref<8x128xf32, #tpu.memory_space<vmem>>) attributes {dimension_semantics = [#tpu.dimension_semantics<parallel>], iteration_bounds = array<i64: 1>, scalar_prefetch = 0 : i64, scratch_operands = 0 : i64, tpu.core_type = #tpu.core_type<tc>, window_params = [{transform_indices = @transform_0, window_bounds = array<i64: 8, 128>}, {pipeline_mode = #tpu.pipeline_mode<synchronous>, transform_indices = @transform_1, window_bounds = array<i64: 1, 128>}, {transform_indices = @transform_2, window_bounds = array<i64: 8, 128>}]} {
    %c0 = arith.constant 0 : index
    %c0_0 = arith.constant 0 : index
    %0 = vector.load %arg1[%c0, %c0_0] : memref<8x128xf32, #tpu.memory_space<vmem>>, vector<8x128xf32>
    %c0_1 = arith.constant 0 : index
    %c0_2 = arith.constant 0 : index
    %1 = vector.load %arg2[%c0_1, %c0_2] : memref<1x128xf32, #tpu.memory_space<vmem>>, vector<1x128xf32>
    %2 = vector.broadcast %1 : vector<1x128xf32> to vector<8x128xf32>
    %3 = arith.addf %0, %2 : vector<8x128xf32>
    %c0_3 = arith.constant 0 : index
    %c0_4 = arith.constant 0 : index
    %4 = vector.load %arg3[%c0_3, %c0_4] : memref<8x128xf32, #tpu.memory_space<vmem>>, vector<8x128xf32>
    tpu.vector_store %arg3[%c0_3, %c0_4], %3 {strides = array<i32>} : memref<8x128xf32, #tpu.memory_space<vmem>>, vector<8x128xf32>,
    return
  }
  func.func @transform_0(%arg0: i32) -> (i32, i32) {
    %c0_i32 = arith.constant 0 : i32
    %c0_i32_0 = arith.constant 0 : i32
    return %arg0, %c0_i32 : i32, i32
  }
  func.func @transform_1(%arg0: i32) -> (i32, i32) {
    %c0_i32 = arith.constant 0 : i32
    %c0_i32_0 = arith.constant 0 : i32
    %c0_i32_1 = arith.constant 0 : i32
    return %c0_i32, %c0_i32_0 : i32, i32
  }
  func.func @transform_2(%arg0: i32) -> (i32, i32) {
    %c0_i32 = arith.constant 0 : i32
    %c0_i32_0 = arith.constant 0 : i32
    return %arg0, %c0_i32 : i32, i32
  }
}

</mosaic_0001>

<bundles_post_ra>
// kernel: tpu_custom_call.1
= control target key start
LH: loop header
LB: loop body
LE: loop exit
PB: predicated region body
PF: predicated region fallthrough
CT: control target
= control target key end

     0   :  { %7 = vsyncpa [#allocation3], 0  ;;  %s122_s0 = inlined_call_operand.hbm [shape: f32[8,128], index: 0, kind: input, shape index: {}]   ;;  %s123_s1 = inlined_call_operand.vmem [shape: f32[1,128], index: 1, kind: input, shape index: {}]   ;;  %s124_s2 = inlined_call_operand.hbm [shape: f32[8,128], index: 2, kind: output, shape index: {}]  }
   0x1   :  { %8 = vsyncpa [#allocation4], 0  ;;  %s96_s9 = smov [#allocation2]  }
   0x2   :  { %s15_s10 = sshll.u32 %s96_s9, 4  ;;  %s16_s10 = int_to_ptr.vmem [resolvable:$true] %s15_s10 }
   0x3   :  { %s60_s11 = scalar_lea.vmem %s16_s10, 128  ;;  %p65_p1 = scmp.lt.s32.totalorder %s16_s10, %s16_s10 }
   0x4   :  { %p61_p0 = scmp.ne.s32.totalorder %s16_s10, %s60_s11  ;;  %p66_p2 = scmp.lt.s32.totalorder %s60_s11, %s60_s11 }
   0x6   :  { %p67_p3 = por %p66_p2, %p65_p1 }
   0x8   :  { %p68_p4 = pnand %p67_p3, %p61_p0 }
   0xa   :  { %71 = shalt.err (!%p68_p4)
}
   0xb   :  { %18 = dma.hbm_to_vmem [thread:$0]  %s122_s0, 128, %s16_s10, [#allocation3]  }
   0xc   :  { %92 = dma.done.wait [#allocation3], 128  }
   0xd   :  { %93 = vsyncadd [#allocation3], 4294967168  ;;  %s97_s14 = smov [#allocation5]   ;;  %v24_v0 = vld [vmem:[#allocation2] sm:$0xff] }
   0xe   :  { %s40_s15 = sshll.u32 %s97_s14, 4  ;;  %v49_v1 = vld [vmem:[%s123_s1] ss:$0 sm:$0xff]  ;;  %s41_s15 = int_to_ptr.vmem [resolvable:$true] %s40_s15 }
   0xf   :  { %v32_v2 = vadd.f32 %v49_v1, %v24_v0  ;;  %s72_s18 = scalar_lea.vmem %s41_s15, 128  ;;  %p77_p6 = scmp.lt.s32.totalorder %s41_s15, %s41_s15 }
  0x10   :  { %p73_p5 = scmp.ne.s32.totalorder %s41_s15, %s72_s18  ;;  %p78_p7 = scmp.lt.s32.totalorder %s72_s18, %s72_s18 }
  0x11   :  { %33 = vst [vmem:[#allocation5] sm:$0xff] %v32_v2 }
  0x12   :  { %p79_p8 = por %p78_p7, %p77_p6 }
  0x14   :  { %p80_p9 = pnand %p79_p8, %p73_p5 }
  0x16   :  { %83 = shalt.err (!%p80_p9)
}
  0x17   :  { %43 = dma.vmem_to_hbm [thread:$0]  %s41_s15, 128, %s124_s2, [#allocation4]  }
  0x18   :  { %94 = dma.done.wait [#allocation4], 128  }
  0x19   :  { %95 = vsyncadd [#allocation4], 4294967168 }
  0x1a   :  { %47 = vsyncpa [#allocation3], 1 }
  0x1b   :  { %48 = vsyncpa [#allocation4], 1 }

</bundles_post_ra>
